<compile_context>
chip_gen: v5e
topology: v5e:2x2
jax: 0.10.0
libtpu: 0.0.40
codegen_flags: <defaults>
</compile_context>

<pallas_src>
import jax
import jax.numpy as jnp
from jax.experimental import pallas as pl
from jax.experimental.pallas import tpu as pltpu

_LANE_WIDTHS = (2048, 1024, 512, 256, 128)
_TARGET_BLOCK_BYTES = 2 * 1024 * 1024  # per-block bytes; x4 for double-buffered in+out


def _mish_kernel(x_ref, o_ref):
    x = x_ref[...].astype(jnp.float32)
    # mish(x) = x * tanh(softplus(x)) = x * (t^2 + 2t) / (t^2 + 2t + 2), t = exp(x).
    # Clamp the exp argument so t^2 stays finite in f32; for x > 20,
    # tanh(softplus(x)) == 1 to f32 precision, so the result is just x.
    xc = jnp.minimum(x, 20.0)
    t = jnp.exp(xc)
    num = t * (t + 2.0)
    den = num + 2.0
    # Cheap approx EUP reciprocal + two Newton-Raphson refinements (VPU-only):
    # error collapses to f32 rounding noise, well inside 1e-5 tolerances.
    r = pl.reciprocal(den, approx=True)
    r = r * (2.0 - den * r)
    r = r * (2.0 - den * r)
    y = jnp.where(x > 20.0, x, x * num * r)
    o_ref[...] = y.astype(o_ref.dtype)


def mish(x: jax.Array) -> jax.Array:
    """Elementwise Mish. Works for any shape; the hot path runs in Pallas."""
    orig_shape = x.shape
    orig_dtype = x.dtype
    n = int(x.size)
    if n == 0:
        return x

    flat = x.reshape(-1)  # free (row-major view)

    # Pick the widest lane-dense slab width that divides n with >= 8 rows.
    width = None
    for w in _LANE_WIDTHS:
        if n % w == 0 and n // w >= 8:
            width = w
            break

    pad = 0
    if width is None:
        # Tiny or oddly-sized tensor: pad up to a whole number of (8,128) tiles.
        # This copies, but only happens when the tensor is too small to matter.
        width = 128
        tile_elems = 8 * 128
        padded = max(tile_elems, ((n + tile_elems - 1) // tile_elems) * tile_elems)
        pad = padded - n
        flat = jnp.concatenate([flat, jnp.zeros((pad,), dtype=orig_dtype)])

    rows = flat.shape[0] // width
    x2d = flat.reshape(rows, width)

    # Block row count targeting ~2 MiB per block (dtype-aware), rounded to a
    # multiple of 32 so it satisfies sublane packing for f32/bf16/int8 alike.
    itemsize = jnp.dtype(orig_dtype).itemsize
    target_rows = max(32, (_TARGET_BLOCK_BYTES // (itemsize * width)) // 32 * 32)
    # Block second-to-last dim must be a multiple of the sublane pack OR equal
    # to the full dim; both branches below satisfy that.
    row_tile = rows if rows <= target_rows else target_rows
    grid = (pl.cdiv(rows, row_tile),)  # last block may be ragged (elementwise-safe)

    cost = pl.CostEstimate(
        flops=10 * n,
        transcendentals=n,               # one exp per element (+ cheap reciprocal)
        bytes_accessed=2 * n * itemsize,  # streaming read + write
    )

    out2d = pl.pallas_call(
        _mish_kernel,
        out_shape=jax.ShapeDtypeStruct((rows, width), orig_dtype),
        grid_spec=pltpu.PrefetchScalarGridSpec(
            num_scalar_prefetch=0,
            grid=grid,
            in_specs=[pl.BlockSpec((row_tile, width), lambda i: (i, 0))],
            out_specs=pl.BlockSpec((row_tile, width), lambda i: (i, 0)),
        ),
        compiler_params=pltpu.CompilerParams(
            dimension_semantics=("parallel",),
        ),
        cost_estimate=cost,
    )(x2d)

    out_flat = out2d.reshape(-1)
    if pad:
        out_flat = out_flat[:n]
    return out_flat.reshape(orig_shape)


def mish_reference(x: jax.Array) -> jax.Array:
    xf = x.astype(jnp.float32)
    return (xf * jnp.tanh(jax.nn.softplus(xf))).astype(x.dtype)


if __name__ == "__main__":
    key = jax.random.PRNGKey(0)
    # NCHW input, matching the PyTorch conv convention of the original module.
    x = jax.random.normal(key, (2, 4, 16, 16), dtype=jnp.float32) * 3.0

    y = mish(x)
    jax.block_until_ready(y)

    y_ref = mish_reference(x)
    assert y.shape == x.shape and y.dtype == x.dtype
    assert jnp.allclose(y, y_ref, atol=1e-5, rtol=1e-5), "mismatch vs reference"

    # Exercise the no-pad ragged path and the tiny-tensor fallback path.
    for shape in [(2, 3, 40, 40), (3, 5, 7)]:
        xi = jax.random.normal(jax.random.PRNGKey(1), shape, dtype=jnp.float32) * 3.0
        yi = mish(xi)
        jax.block_until_ready(yi)
        assert yi.shape == xi.shape
        assert jnp.allclose(yi, mish_reference(xi), atol=1e-5, rtol=1e-5), shape

    print("KERNEL_OK")
</pallas_src>

<mosaic_0001>
module attributes {stable_mosaic.version = 11 : i64} {
  func.func @_mish_kernel(%arg0: i32, %arg1: memref<8x256xf32, #tpu.memory_space<vmem>>, %arg2: memref<8x256xf32, #tpu.memory_space<vmem>>) attributes {dimension_semantics = [#tpu.dimension_semantics<parallel>], iteration_bounds = array<i64: 1>, scalar_prefetch = 0 : i64, scratch_operands = 0 : i64, tpu.core_type = #tpu.core_type<tc>, window_params = [{transform_indices = @transform_0, window_bounds = array<i64: 8, 256>}, {transform_indices = @transform_1, window_bounds = array<i64: 8, 256>}]} {
    %c0 = arith.constant 0 : index
    %c0_0 = arith.constant 0 : index
    %0 = vector.load %arg1[%c0, %c0_0] : memref<8x256xf32, #tpu.memory_space<vmem>>, vector<8x256xf32>
    %cst = arith.constant 2.000000e+01 : f32
    %1 = vector.broadcast %cst : f32 to vector<8x256xf32>
    %2 = arith.minimumf %0, %1 : vector<8x256xf32>
    %3 = math.exp %2 : vector<8x256xf32>
    %cst_1 = arith.constant 2.000000e+00 : f32
    %4 = vector.broadcast %cst_1 : f32 to vector<8x256xf32>
    %5 = arith.addf %3, %4 : vector<8x256xf32>
    %6 = arith.mulf %3, %5 : vector<8x256xf32>
    %cst_2 = arith.constant 2.000000e+00 : f32
    %7 = vector.broadcast %cst_2 : f32 to vector<8x256xf32>
    %8 = arith.addf %6, %7 : vector<8x256xf32>
    %9 = tpu.reciprocal %8 {approx = true} : vector<8x256xf32> -> vector<8x256xf32>
    %10 = arith.mulf %8, %9 : vector<8x256xf32>
    %cst_3 = arith.constant 2.000000e+00 : f32
    %11 = vector.broadcast %cst_3 : f32 to vector<8x256xf32>
    %12 = arith.subf %11, %10 : vector<8x256xf32>
    %13 = arith.mulf %9, %12 : vector<8x256xf32>
    %14 = arith.mulf %8, %13 : vector<8x256xf32>
    %cst_4 = arith.constant 2.000000e+00 : f32
    %15 = vector.broadcast %cst_4 : f32 to vector<8x256xf32>
    %16 = arith.subf %15, %14 : vector<8x256xf32>
    %17 = arith.mulf %13, %16 : vector<8x256xf32>
    %cst_5 = arith.constant 2.000000e+01 : f32
    %18 = vector.broadcast %cst_5 : f32 to vector<8x256xf32>
    %19 = arith.cmpf ogt, %0, %18 : vector<8x256xf32>
    %20 = arith.mulf %0, %6 : vector<8x256xf32>
    %21 = arith.mulf %20, %17 : vector<8x256xf32>
    %22 = arith.select %19, %0, %21 : vector<8x256xi1>, vector<8x256xf32>
    %c0_6 = arith.constant 0 : index
    %c0_7 = arith.constant 0 : index
    %23 = vector.load %arg2[%c0_6, %c0_7] : memref<8x256xf32, #tpu.memory_space<vmem>>, vector<8x256xf32>
    tpu.vector_store %arg2[%c0_6, %c0_7], %22 {strides = array<i32>} : memref<8x256xf32, #tpu.memory_space<vmem>>, vector<8x256xf32>,
    return
  }
  func.func @transform_0(%arg0: i32) -> (i32, i32) {
    %c0_i32 = arith.constant 0 : i32
    %c0_i32_0 = arith.constant 0 : i32
    return %arg0, %c0_i32 : i32, i32
  }
  func.func @transform_1(%arg0: i32) -> (i32, i32) {
    %c0_i32 = arith.constant 0 : i32
    %c0_i32_0 = arith.constant 0 : i32
    return %arg0, %c0_i32 : i32, i32
  }
}

</mosaic_0001>

<bundles_post_ra>
// kernel: tpu_custom_call.1
= control target key start
LH: loop header
LB: loop body
LE: loop exit
PB: predicated region body
PF: predicated region fallthrough
CT: control target
= control target key end

     0   :  { %6 = vsyncpa [#allocation3], 0  ;;  %s158_s0 = inlined_call_operand.hbm [shape: f32[8,256], index: 0, kind: input, shape index: {}]   ;;  %s159_s1 = inlined_call_operand.hbm [shape: f32[8,256], index: 1, kind: output, shape index: {}]  }
   0x1   :  { %7 = vsyncpa [#allocation4], 0  ;;  %s13_s8 = sshll.u32 %s158_s0, 4  ;;  %s140_s9 = smov [#allocation2]   ;;  %s14_s8 = int_to_ptr.hbm [resolvable:$true] %s13_s8 }
   0x2   :  { %s15_s10 = sshll.u32 %s140_s9, 4  ;;  %s16_s10 = int_to_ptr.vmem [resolvable:$true] %s15_s10 }
   0x3   :  { %18 = dma.hbm_to_vmem [thread:$0]  %s14_s8, 256, %s16_s10, [#allocation3]  }
   0x4   :  { %136 = dma.done.wait [#allocation3], 256  }
   0x5   :  { %137 = vsyncadd [#allocation3], 4294967040  ;;  %v23_v0 = vld [vmem:[#allocation2] sm:$0xff]  ;;  %v24_v1 = vld [vmem:[#allocation2 + $0x8] sm:$0xff]  ;;  %s141_s0 = smov [#allocation5]   ;;  %s68_s14 = sshll.u32 %s159_s1, 4  ;;  %s69_s14 = int_to_ptr.hbm [resolvable:$true] %s68_s14 }
   0x6   :  { %v25_v2 = vmin.f32 %v23_v0, 20.0  ;;  %v26_v3 = vmin.f32 %v24_v1, 20.0  ;;  %vm51_vm0 = vcmp.gt.f32.partialorder %v23_v0, 20.0  ;;  %s66_s11 = sshll.u32 %s141_s0, 4  ;;  %vm52_vm1 = vcmp.gt.f32.partialorder %v24_v1, 20.0  ;;  %s67_s11 = int_to_ptr.vmem [resolvable:$true] %s66_s11 }
   0x8   :  { %v27_v4 = vmul.f32 1.442695, %v25_v2  ;;  %v29_v5 = vmul.f32 1.442695, %v26_v3 }
   0xa   :  { %80 = vpow2.f32 %v27_v4 }
   0xb   :  { %82 = vpow2.f32 %v29_v5 }
  0x10   :  { %v81_v6 = vpop.eup %80 }
  0x11   :  { %v83_v7 = vpop.eup %82  ;;  %v31_v8 = vadd.f32 2.0, %v81_v6 }
  0x12   :  { %v32_v9 = vadd.f32 2.0, %v83_v7 }
  0x13   :  { %v33_v10 = vmul.f32 %v81_v6, %v31_v8 }
  0x14   :  { %v34_v11 = vmul.f32 %v83_v7, %v32_v9 }
  0x15   :  { %v35_v12 = vadd.f32 2.0, %v33_v10  ;;  %v53_v25 = vmul.f32 %v33_v10, %v23_v0 }
  0x16   :  { %v36_v13 = vadd.f32 2.0, %v34_v11  ;;  %v54_v27 = vmul.f32 %v34_v11, %v24_v1 }
  0x17   :  { %84 = vrcp.f32 %v35_v12 }
  0x18   :  { %86 = vrcp.f32 %v36_v13 }
  0x1d   :  { %v85_v14 = vpop.eup %84 }
  0x1e   :  { %v87_v15 = vpop.eup %86  ;;  %v39_v16 = vmul.f32 %v85_v14, %v35_v12 }
  0x1f   :  { %v40_v17 = vmul.f32 %v87_v15, %v36_v13 }
  0x20   :  { %v41_v18 = vsub.f32 2.0, %v39_v16 }
  0x21   :  { %v42_v19 = vsub.f32 2.0, %v40_v17 }
  0x22   :  { %v43_v20 = vmul.f32 %v85_v14, %v41_v18 }
  0x23   :  { %v44_v21 = vmul.f32 %v87_v15, %v42_v19 }
  0x24   :  { %v45_v22 = vmul.f32 %v43_v20, %v35_v12 }
  0x25   :  { %v46_v23 = vmul.f32 %v44_v21, %v36_v13 }
  0x26   :  { %v47_v24 = vsub.f32 2.0, %v45_v22 }
  0x27   :  { %v48_v26 = vsub.f32 2.0, %v46_v23 }
  0x28   :  { %v49_v28 = vmul.f32 %v47_v24, %v43_v20 }
  0x29   :  { %v50_v29 = vmul.f32 %v48_v26, %v44_v21 }
  0x2a   :  { %v55_v30 = vmul.f32 %v53_v25, %v49_v28 }
  0x2b   :  { %v56_v31 = vmul.f32 %v54_v27, %v50_v29 }
  0x2c   :  { %v57_v32 = vsel %vm51_vm0, %v23_v0, %v55_v30 }
  0x2d   :  { %59 = vst [vmem:[#allocation5] sm:$0xff] %v57_v32  ;;  %v58_v33 = vsel %vm52_vm1, %v24_v1, %v56_v31 }
  0x2e   :  { %60 = vst [vmem:[#allocation5 + $0x8] sm:$0xff] %v58_v33 }
  0x2f   :  { %71 = dma.vmem_to_hbm [thread:$0]  %s67_s11, 256, %s69_s14, [#allocation4]  }
  0x30   :  { %138 = dma.done.wait [#allocation4], 256  }
  0x31   :  { %139 = vsyncadd [#allocation4], 4294967040 }
  0x32   :  { %76 = vsyncpa [#allocation3], 1 }
  0x33   :  { %77 = vsyncpa [#allocation4], 1 }

</bundles_post_ra>
